<compile_context>
chip_gen: v6e
topology: v6e:2x2x1
jax: 0.10.0
libtpu: 0.0.40
codegen_flags: <defaults>
</compile_context>

<pallas_src>
import jax
import jax.numpy as jnp
from jax import lax
from jax.experimental import pallas as pl
from jax.experimental.pallas import tpu as pltpu


def _round_up(x, m):
    return ((x + m - 1) // m) * m


def _mf_dot_kernel(uidx_ref, iidx_ref, uemb_t_ref, iemb_t_ref, out_ref):
    """Score TILE_B (user, item) pairs.

    uidx_ref / iidx_ref : (1, 1, TILE_B) int32  pair indices (pairs on lanes)
    uemb_t_ref          : (D, Ru) f32           users table (transposed), VMEM-resident
    iemb_t_ref          : (D, Ri) f32           items table (transposed), VMEM-resident
    out_ref             : (1, 1, TILE_B) f32    dot(user_emb, item_emb) per pair
    """
    u_idx = uidx_ref[...][0]                  # (1, TILE_B) int32
    i_idx = iidx_ref[...][0]                  # (1, TILE_B) int32
    ru = uemb_t_ref.shape[1]
    ri = iemb_t_ref.shape[1]

    # One-hot row-selection matrices, built with broadcasts only (no relayout):
    # table rows on sublanes, pairs on lanes.
    u_oh = (lax.broadcasted_iota(jnp.int32, (ru, 1), 0) == u_idx).astype(jnp.float32)  # (Ru, TILE_B)
    i_oh = (lax.broadcasted_iota(jnp.int32, (ri, 1), 0) == i_idx).astype(jnp.float32)  # (Ri, TILE_B)

    # Row gather as one-hot matmul on the MXU: (D, R) @ (R, TILE_B) -> (D, TILE_B).
    # HIGHEST precision keeps the f32 table values exact through the MXU
    # (the 0/1 one-hot operand is exactly representable in bf16).
    u_g = jnp.dot(uemb_t_ref[...], u_oh,
                  preferred_element_type=jnp.float32,
                  precision=lax.Precision.HIGHEST)
    i_g = jnp.dot(iemb_t_ref[...], i_oh,
                  preferred_element_type=jnp.float32,
                  precision=lax.Precision.HIGHEST)

    # Per-pair dot product: full-lane VPU multiply + sublane (XLU) reduction.
    dots = jnp.sum(u_g * i_g, axis=0, keepdims=True)        # (1, TILE_B)
    out_ref[...] = dots[None]                                # (1, 1, TILE_B)


def _mf_dots(user_idx, item_idx, users_emb, items_emb, *, tile_b=512):
    """Batched MF scores: out[p] = dot(users_emb[user_idx[p]], items_emb[item_idx[p]])."""
    user_idx = jnp.asarray(user_idx, jnp.int32).reshape(-1)
    item_idx = jnp.asarray(item_idx, jnp.int32).reshape(-1)
    b = user_idx.shape[0]

    # Adaptive lane tile: small batches don't pay for 512 lanes of padded work.
    tile_b_eff = _round_up(min(max(tile_b, 128), max(128, _round_up(b, 128))), 128)
    num_tiles = max(1, pl.cdiv(b, tile_b_eff))
    b_pad = num_tiles * tile_b_eff
    pad = b_pad - b
    u_tiles = jnp.pad(user_idx, (0, pad)).reshape(num_tiles, 1, tile_b_eff)
    i_tiles = jnp.pad(item_idx, (0, pad)).reshape(num_tiles, 1, tile_b_eff)

    # Transpose tables once in XLA so pairs sit on the lane axis in-kernel, and
    # pad the row count to a sublane multiple (padded rows are zero and are
    # never selected by the one-hot, so results are unchanged).
    users_emb = jnp.asarray(users_emb, jnp.float32)
    items_emb = jnp.asarray(items_emb, jnp.float32)
    ru_pad = _round_up(users_emb.shape[0], 8)
    ri_pad = _round_up(items_emb.shape[0], 8)
    uemb_t = jnp.pad(users_emb, ((0, ru_pad - users_emb.shape[0]), (0, 0))).T  # (D, Ru)
    iemb_t = jnp.pad(items_emb, ((0, ri_pad - items_emb.shape[0]), (0, 0))).T  # (D, Ri)
    d, ru = uemb_t.shape
    _, ri = iemb_t.shape

    # Rough VMEM budget: resident tables + double-buffered per-tile working set.
    tile_bytes = 4 * tile_b_eff * (2 * d + ru + ri + 4)
    table_bytes = 4 * d * (ru + ri)
    vmem_limit = min(64 * 1024 * 1024,
                     max(16 * 1024 * 1024, 2 * (table_bytes + 2 * tile_bytes)))

    out = pl.pallas_call(
        _mf_dot_kernel,
        out_shape=jax.ShapeDtypeStruct((num_tiles, 1, tile_b_eff), jnp.float32),
        grid=(num_tiles,),
        in_specs=[
            pl.BlockSpec((1, 1, tile_b_eff), lambda t: (t, 0, 0)),
            pl.BlockSpec((1, 1, tile_b_eff), lambda t: (t, 0, 0)),
            pl.BlockSpec((d, ru), lambda t: (0, 0)),   # full users table, VMEM-resident
            pl.BlockSpec((d, ri), lambda t: (0, 0)),   # full items table, VMEM-resident
        ],
        out_specs=pl.BlockSpec((1, 1, tile_b_eff), lambda t: (t, 0, 0)),
        compiler_params=pltpu.CompilerParams(
            dimension_semantics=("parallel",),
            vmem_limit_bytes=vmem_limit),
    )(u_tiles, i_tiles, uemb_t, iemb_t)

    return out.reshape(b_pad)[:b]


def mf_forward(user, item, users_emb, items_emb, *, tile_b=512):
    """MF.forward: (user, item) -> dot(users_emb[user], items_emb[item]).

    Accepts a single scalar pair (returns a scalar, matching the PyTorch
    module) or batched index arrays (returns per-pair scores).
    """
    user = jnp.asarray(user, jnp.int32)
    item = jnp.asarray(item, jnp.int32)
    scalar = user.ndim == 0
    out = _mf_dots(user.reshape(-1), item.reshape(-1), users_emb, items_emb,
                   tile_b=tile_b)
    return out[0] if scalar else out


if __name__ == "__main__":
    # Small deterministic setup consistent with MF.__init__ (embedding_dim=64):
    #   users_emb: (user_nums + 1, D), items_emb: (item_nums + 1, D), N(0,1) init.
    user_nums, item_nums, emb_dim = 10, 20, 64
    key = jax.random.PRNGKey(0)
    k_u, k_i, k_uid, k_iid = jax.random.split(key, 4)
    users_emb = jax.random.normal(k_u, (user_nums + 1, emb_dim), dtype=jnp.float32)
    items_emb = jax.random.normal(k_i, (item_nums + 1, emb_dim), dtype=jnp.float32)

    # 1) Single-pair forward, identical semantics to MF.forward(user, item).
    user, item = 3, 7
    res = mf_forward(user, item, users_emb, items_emb)
    jax.block_until_ready(res)
    ref = jnp.dot(users_emb[user], items_emb[item])
    assert jnp.allclose(res, ref, rtol=1e-4, atol=1e-4), (res, ref)

    # 2) Batched forward: many (user, item) pairs scored in one pallas_call.
    batch = 1000
    users = jax.random.randint(k_uid, (batch,), 0, user_nums + 1, dtype=jnp.int32)
    items = jax.random.randint(k_iid, (batch,), 0, item_nums + 1, dtype=jnp.int32)
    res_b = mf_forward(users, items, users_emb, items_emb)
    jax.block_until_ready(res_b)
    ref_b = jnp.sum(users_emb[users] * items_emb[items], axis=-1)
    assert jnp.allclose(res_b, ref_b, rtol=1e-4, atol=1e-4), (
        float(jnp.max(jnp.abs(res_b - ref_b))))

    print("KERNEL_OK")
</pallas_src>

<mosaic_0001>
module attributes {stable_mosaic.version = 11 : i64} {
  func.func @_mf_dot_kernel(%arg0: i32, %arg1: memref<1x1x128xi32, #tpu.memory_space<vmem>>, %arg2: memref<1x1x128xi32, #tpu.memory_space<vmem>>, %arg3: memref<64x16xf32, #tpu.memory_space<vmem>>, %arg4: memref<64x24xf32, #tpu.memory_space<vmem>>, %arg5: memref<1x1x128xf32, #tpu.memory_space<vmem>>) attributes {dimension_semantics = [#tpu.dimension_semantics<parallel>], iteration_bounds = array<i64: 1>, scalar_prefetch = 0 : i64, scratch_operands = 0 : i64, tpu.core_type = #tpu.core_type<tc>, window_params = [{transform_indices = @transform_0, window_bounds = array<i64: 1, 1, 128>}, {transform_indices = @transform_1, window_bounds = array<i64: 1, 1, 128>}, {pipeline_mode = #tpu.pipeline_mode<synchronous>, transform_indices = @transform_2, window_bounds = array<i64: 64, 16>}, {pipeline_mode = #tpu.pipeline_mode<synchronous>, transform_indices = @transform_3, window_bounds = array<i64: 64, 24>}, {transform_indices = @transform_4, window_bounds = array<i64: 1, 1, 128>}]} {
    %c0 = arith.constant 0 : index
    %c0_0 = arith.constant 0 : index
    %c0_1 = arith.constant 0 : index
    %0 = vector.load %arg1[%c0, %c0_0, %c0_1] : memref<1x1x128xi32, #tpu.memory_space<vmem>>, vector<1x1x128xi32>
    %1 = vector.shape_cast %0 : vector<1x1x128xi32> to vector<1x128xi32>
    %c0_2 = arith.constant 0 : index
    %c0_3 = arith.constant 0 : index
    %c0_4 = arith.constant 0 : index
    %2 = vector.load %arg2[%c0_2, %c0_3, %c0_4] : memref<1x1x128xi32, #tpu.memory_space<vmem>>, vector<1x1x128xi32>
    %3 = vector.shape_cast %2 : vector<1x1x128xi32> to vector<1x128xi32>
    %4 = tpu.iota {dimensions = array<i32: 0>} : vector<16x1xi32>
    %5 = vector.broadcast %4 : vector<16x1xi32> to vector<16x128xi32>
    %6 = vector.broadcast %1 : vector<1x128xi32> to vector<16x128xi32>
    %7 = arith.cmpi eq, %5, %6 : vector<16x128xi32>
    %8 = arith.extui %7 : vector<16x128xi1> to vector<16x128xi32>
    %9 = arith.sitofp %8 : vector<16x128xi32> to vector<16x128xf32>
    %10 = tpu.iota {dimensions = array<i32: 0>} : vector<24x1xi32>
    %11 = vector.broadcast %10 : vector<24x1xi32> to vector<24x128xi32>
    %12 = vector.broadcast %3 : vector<1x128xi32> to vector<24x128xi32>
    %13 = arith.cmpi eq, %11, %12 : vector<24x128xi32>
    %14 = arith.extui %13 : vector<24x128xi1> to vector<24x128xi32>
    %15 = arith.sitofp %14 : vector<24x128xi32> to vector<24x128xf32>
    %c0_5 = arith.constant 0 : index
    %c0_6 = arith.constant 0 : index
    %16 = vector.load %arg3[%c0_5, %c0_6] : memref<64x16xf32, #tpu.memory_space<vmem>>, vector<64x16xf32>
    %cst = arith.constant dense<0.000000e+00> : vector<64x128xf32>
    %17 = tpu.matmul %16, %9, %cst {dimension_numbers = #tpu.dot_dimension_numbers<[1], [0], [0], [1], [0, 0, 1, 1], [], []>, precision = #tpu.contract_precision<fp32>} : vector<64x16xf32>, vector<16x128xf32>, vector<64x128xf32> -> vector<64x128xf32>
    %c0_7 = arith.constant 0 : index
    %c0_8 = arith.constant 0 : index
    %18 = vector.load %arg4[%c0_7, %c0_8] : memref<64x24xf32, #tpu.memory_space<vmem>>, vector<64x24xf32>
    %cst_9 = arith.constant dense<0.000000e+00> : vector<64x128xf32>
    %19 = tpu.matmul %18, %15, %cst_9 {dimension_numbers = #tpu.dot_dimension_numbers<[1], [0], [0], [1], [0, 0, 1, 1], [], []>, precision = #tpu.contract_precision<fp32>} : vector<64x24xf32>, vector<24x128xf32>, vector<64x128xf32> -> vector<64x128xf32>
    %20 = arith.mulf %17, %19 : vector<64x128xf32>
    %cst_10 = arith.constant dense<0.000000e+00> : vector<128xf32>
    %21 = vector.multi_reduction <add>, %20, %cst_10 [0] : vector<64x128xf32> to vector<128xf32>
    %22 = vector.shape_cast %21 : vector<128xf32> to vector<1x128xf32>
    %23 = vector.shape_cast %22 : vector<1x128xf32> to vector<1x1x128xf32>
    %c0_11 = arith.constant 0 : index
    %c0_12 = arith.constant 0 : index
    %c0_13 = arith.constant 0 : index
    %24 = vector.load %arg5[%c0_11, %c0_12, %c0_13] : memref<1x1x128xf32, #tpu.memory_space<vmem>>, vector<1x1x128xf32>
    tpu.vector_store %arg5[%c0_11, %c0_12, %c0_13], %23 {strides = array<i32>} : memref<1x1x128xf32, #tpu.memory_space<vmem>>, vector<1x1x128xf32>,
    return
  }
  func.func @transform_0(%arg0: i32) -> (i32, i32, i32) {
    %c0_i32 = arith.constant 0 : i32
    %c0_i32_0 = arith.constant 0 : i32
    %c0_i32_1 = arith.constant 0 : i32
    return %arg0, %c0_i32, %c0_i32_0 : i32, i32, i32
  }
  func.func @transform_1(%arg0: i32) -> (i32, i32, i32) {
    %c0_i32 = arith.constant 0 : i32
    %c0_i32_0 = arith.constant 0 : i32
    %c0_i32_1 = arith.constant 0 : i32
    return %arg0, %c0_i32, %c0_i32_0 : i32, i32, i32
  }
  func.func @transform_2(%arg0: i32) -> (i32, i32) {
    %c0_i32 = arith.constant 0 : i32
    %c0_i32_0 = arith.constant 0 : i32
    %c0_i32_1 = arith.constant 0 : i32
    return %c0_i32, %c0_i32_0 : i32, i32
  }
  func.func @transform_3(%arg0: i32) -> (i32, i32) {
    %c0_i32 = arith.constant 0 : i32
    %c0_i32_0 = arith.constant 0 : i32
    %c0_i32_1 = arith.constant 0 : i32
    return %c0_i32, %c0_i32_0 : i32, i32
  }
  func.func @transform_4(%arg0: i32) -> (i32, i32, i32) {
    %c0_i32 = arith.constant 0 : i32
    %c0_i32_0 = arith.constant 0 : i32
    %c0_i32_1 = arith.constant 0 : i32
    return %arg0, %c0_i32, %c0_i32_0 : i32, i32, i32
  }
}

</mosaic_0001>

<bundles_post_ra>
// kernel: tpu_custom_call.1
= control target key start
LH: loop header
LB: loop body
LE: loop exit
PB: predicated region body
PF: predicated region fallthrough
CT: control target
= control target key end

     0   :  { %v20_v0 = vlaneseq  ;;  %vm55_vm0 = vcmask 130048   ;;  %v2059_v24 = vmov 0.0   ;;  %s2687_s0 = inlined_call_operand.vmem [shape: s32[1,1,128], index: 0, kind: input, shape index: {}]   ;;  %s2688_s1 = inlined_call_operand.vmem [shape: s32[1,1,128], index: 1, kind: input, shape index: {}]   ;;  %s2689_s2 = inlined_call_operand.vmem [shape: f32[64,16], index: 2, kind: input, shape index: {}]   ;;  %s2690_s3 = inlined_call_operand.vmem [shape: f32[64,24], index: 3, kind: input, shape index: {}]   ;;  %s2691_s4 = inlined_call_operand.hbm [shape: f32[1,1,128], index: 4, kind: output, shape index: {}]  }
   0x1   :  { %v47_v1 = vld [vmem:[%s2689_s2] sm:$0xff]  ;;  %v48_v2 = vld [vmem:[%s2689_s2 + $0x8] sm:$0xff]  ;;  %v49_v5 = vld [vmem:[%s2689_s2 + $0x10] sm:$0xff] }
   0x2   :  { %v57_v3 = vsel %vm55_vm0, %v47_v1, 0  ;;  %v60_v4 = vsel %vm55_vm0, %v48_v2, 0  ;;  %v50_v6 = vld [vmem:[%s2689_s2 + $0x18] sm:$0xff]  ;;  %v51_v7 = vld [vmem:[%s2689_s2 + $0x20] sm:$0xff]  ;;  %v2104_v8 = vshrl.u32 %v20_v0, 7  ;;  %v63_v11 = vsel %vm55_vm0, %v49_v5, 0 }
   0x3   :  { %v2106_v9 = vand.u32 4294901760, %v57_v3  ;;  %v2108_v10 = vand.u32 4294901760, %v60_v4  ;;  %v52_v12 = vld [vmem:[%s2689_s2 + $0x28] sm:$0xff]  ;;  %v1682_v13 = vld [vmem:[%s2687_s0] ss:$0 sm:$0xff]  ;;  %v2117_v14 = vand.u32 4294901760, %v63_v11 }
   0x4   :  { %v66_v15 = vsel %vm55_vm0, %v50_v6, 0  ;;  %v69_v16 = vsel %vm55_vm0, %v51_v7, 0  ;;  %v72_v17 = vsel %vm55_vm0, %v52_v12, 0  ;;  %v2123_v18 = vadd.s32 8, %v2104_v8 }
   0x5   :  { %vm2126_vm1 = vcmp.eq.s32.totalorder %v2104_v8, %v1682_v13  ;;  %v2131_v20 = vsub.f32 %v57_v3, %v2106_v9  ;;  %v2134_v21 = vsub.f32 %v60_v4, %v2108_v10  ;;  %1850 = vmatprep.mubr.f32.mxu1 %v2106_v9  ;;  %v2138_v22 = vsub.f32 %v63_v11, %v2117_v14 }
   0x6   :  { %v2140_v23 = vand.u32 4294901760, %v66_v15  ;;  %v1683_v25 = vsel %vm2126_vm1, 1.0, %v2059_v24  ;;  %v2145_v26 = vand.u32 4294901760, %v69_v16  ;;  %vm2148_vm2 = vcmp.eq.s32.totalorder %v2123_v18, %v1682_v13 }
   0x7   :  { %v149_v28 = vand.u32 4294901760, %v2131_v20  ;;  %v159_v29 = vand.u32 4294901760, %v2134_v21  ;;  %v264_v30 = vsub.f32 %v1683_v25, %v1683_v25 }
   0x8   :  { %9 = vsyncpa [#allocation3], 0  ;;  %v2060_v31 = vmov 1.0   ;;  %v169_v32 = vand.u32 4294901760, %v2138_v22  ;;  %v1684_v33 = vsel %vm2148_vm2, 1.0, %v2059_v24  ;;  %v2162_v34 = vsub.f32 %v66_v15, %v2140_v23  ;;  %v53_v44 = vld [vmem:[%s2689_s2 + $0x30] sm:$0xff] }
   0x9   :  { %1830 = vmatprep.subr.msk.mxu0 %vm2148_vm2, %v2060_v31  ;;  %v2165_v35 = vsub.f32 %v69_v16, %v2145_v26  ;;  %v150_v36 = vsub.f32 %v2131_v20, %v149_v28  ;;  %v160_v37 = vsub.f32 %v2134_v21, %v159_v29  ;;  %v257_v38 = vsub.f32 %v1684_v33, %v1684_v33  ;;  %v54_v45 = vld [vmem:[%s2689_s2 + $0x38] sm:$0xff]  ;;  %v1685_v7 = vld [vmem:[%s2688_s1] ss:$0 sm:$0xff]  ;;  %v846_v19 = vld [vmem:[%s2690_s3 + $0x30] sm:$0xff] }
   0xa   :  { %1831 = vmatpush3.msk.msra.mxu0 %vm2148_vm2, %v2060_v31  ;;  %v2176_v39 = vand.u32 4294901760, %v264_v30  ;;  %v170_v40 = vsub.f32 %v2138_v22, %v169_v32  ;;  %v179_v41 = vand.u32 4294901760, %v2162_v34  ;;  %v2186_v43 = vand.u32 4294901760, %v72_v17  ;;  %v840_v33 = vld [vmem:[%s2690_s3] sm:$0xff] }
   0xb   :  { %1832 = vmatprep.subr.msk.mxu0 %vm2126_vm1, %v2060_v31  ;;  %v189_v42 = vand.u32 4294901760, %v2165_v35  ;;  %v151_v46 = vand.u32 4294901760, %v150_v36  ;;  %v161_v47 = vand.u32 4294901760, %v160_v37  ;;  %v258_v48 = vand.u32 4294901760, %v257_v38 }
   0xc   :  { %1833 = vmatpush3.msk.msra.mxu0 %vm2126_vm1, %v2060_v31  ;;  %v266_v49 = vsub.f32 %v264_v30, %v2176_v39  ;;  %v171_v50 = vand.u32 4294901760, %v170_v40  ;;  %v180_v51 = vsub.f32 %v2162_v34, %v179_v41  ;;  %v2205_v53 = vsub.f32 %v72_v17, %v2186_v43 }
   0xd   :  { %1862 = vmatprep.subr.mxu0 %v257_v38  ;;  %v190_v52 = vsub.f32 %v2165_v35, %v189_v42  ;;  %1834 = vmatprep.mubr.f32.mxu0 %v151_v46  ;;  %v259_v54 = vsub.f32 %v257_v38, %v258_v48  ;;  %v75_v55 = vsel %vm55_vm0, %v53_v44, 0  ;;  %v78_v56 = vsel %vm55_vm0, %v54_v45, 0  ;;  %v843_v44 = vld [vmem:[%s2690_s3 + $0x18] sm:$0xff] }
   0xe   :  { %1835 = vmatmul.mubr.f32.vlgmr.msra.gmra.mxu0 %v161_v47  ;;  %v181_v57 = vand.u32 4294901760, %v180_v51  ;;  %v199_v58 = vand.u32 4294901760, %v2205_v53  ;;  %v2210_v59 = vand.u32 4294901760, %v75_v55  ;;  %v267_v61 = vand.u32 4294901760, %v266_v49  ;;  %v845_v47 = vld [vmem:[%s2690_s3 + $0x28] sm:$0xff] }
   0xf   :  { %1837 = vmatprep.mubr.f32.mxu0 %v171_v50  ;;  %v260_v60 = vand.u32 4294901760, %v259_v54  ;;  %1863 = vmatpush3.msra.mxu0 %v257_v38  ;;  %v191_v62 = vand.u32 4294901760, %v190_v52  ;;  %v2212_v63 = vand.u32 4294901760, %v78_v56  ;;  %v33_v5 = vadd.s32 16, %v2104_v8 }
  0x10   :  { %v200_v0 = vsub.f32 %v2205_v53, %v199_v58  ;;  %v2218_v1 = vsub.f32 %v75_v55, %v2210_v59  ;;  %1864 = vmatprep.subr.mxu0 %v264_v30  ;;  %vm848_vm4 = vcmask 195584   ;;  %vm2281_vm5 = vcmp.eq.s32.totalorder %v2123_v18, %v1685_v7 }
  0x11   :  { %1846 = vmatprep.subr.mxu1 %v260_v60  ;;  %v2221_v2 = vsub.f32 %v78_v56, %v2212_v63  ;;  %1865 = vmatpush3.msra.mxu0 %v264_v30  ;;  %vm2242_vm3 = vcmp.eq.s32.totalorder %v33_v5, %v1685_v7  ;;  %v850_v37 = vsel %vm848_vm4, %v840_v33, 0  ;;  %v1687_v18 = vsel %vm2281_vm5, 1.0, %v2059_v24 }
  0x12   :  { %1838 = vmatmul.mubr.f32.gmra.mxu0 %v181_v57  ;;  %1847 = vmatpush3.msra.mxu1 %v260_v60  ;;  %v201_v3 = vand.u32 4294901760, %v200_v0  ;;  %v209_v4 = vand.u32 4294901760, %v2218_v1  ;;  %v1688_v17 = vsel %vm2242_vm3, 1.0, %v2059_v24  ;;  %vm2308_vm6 = vcmp.eq.s32.totalorder %v2104_v8, %v1685_v7  ;;  %v847_v57 = vld [vmem:[%s2690_s3 + $0x38] sm:$0xff] }
  0x13   :  { %1848 = vmatprep.subr.mxu1 %v267_v61  ;;  %1840 = vmatprep.mubr.f32.mxu0 %v191_v62  ;;  %v219_v6 = vand.u32 4294901760, %v2221_v2  ;;  %v2262_v25 = vsub.f32 %v1688_v17, %v1688_v17  ;;  %v2321_v40 = vsub.f32 %v1687_v18, %v1687_v18  ;;  %v868_v56 = vsel %vm848_vm4, %v846_v19, 0 }
  0x14   :  { %1849 = vmatpush3.msra.mxu1 %v267_v61  ;;  %v210_v11 = vsub.f32 %v2218_v1, %v209_v4  ;;  %1894 = vmatprep.subr.mxu0 %v258_v48 }
  0x15   :  { %1851 = vmatmul.mubr.f32.vlgmr.msra.gmra.mxu1 %v2108_v10  ;;  %1878 = vmatprep.subr.msk.mxu1 %vm2148_vm2, %v2060_v31  ;;  %v220_v12 = vsub.f32 %v2221_v2, %v219_v6  ;;  %v2270_v30 = vand.u32 4294901760, %v2262_v25 }
  0x16   :  { %1841 = vmatmul.mubr.f32.gmra.mxu0 %v201_v3  ;;  %1879 = vmatpush3.msk.msra.mxu1 %vm2148_vm2, %v2060_v31  ;;  %v211_v13 = vand.u32 4294901760, %v210_v11 }
  0x17   :  { %1853 = vmatprep.mubr.f32.mxu1 %v2117_v14  ;;  %v221_v16 = vand.u32 4294901760, %v220_v12  ;;  %1880 = vmatprep.subr.msk.mxu1 %vm2126_vm1, %v2060_v31  ;;  %v1051_v38 = vsub.f32 %v2262_v25, %v2270_v30 }
  0x18   :  { %1843 = vmatprep.mubr.f32.mxu0 %v211_v13  ;;  %1881 = vmatpush3.msk.msra.mxu1 %vm2126_vm1, %v2060_v31 }
  0x19   :  { %1854 = vmatmul.mubr.f32.gmra.mxu1 %v2140_v23  ;;  %1910 = vmatprep.subr.msk.mxu1 %vm2148_vm2, %v2060_v31  ;;  %v1052_v27 = vand.u32 4294901760, %v1051_v38 }
  0x1a   :  { %1844 = vmatmul.mubr.f32.gmra.mxu0 %v221_v16  ;;  %1856 = vmatprep.mubr.f32.mxu1 %v2145_v26 }
  0x1b   :  { %1866 = vmatprep.mubr.f32.mxu0 %v2131_v20  ;;  %v841_v20 = vld [vmem:[%s2690_s3 + $0x8] sm:$0xff] }
  0x1d   :  { %1857 = vmatmul.mubr.f32.gmra.mxu1 %v2186_v43 }
  0x1e   :  { %1867 = vmatmul.mubr.f32.vlgmr.msra.gmra.mxu0 %v2134_v21  ;;  %1859 = vmatprep.mubr.f32.mxu1 %v2210_v59  ;;  %v2312_v21 = vand.u32 4294901760, %v850_v37 }
  0x1f   :  { %1869 = vmatprep.mubr.f32.mxu0 %v2138_v22  ;;  %1895 = vmatpush3.msra.mxu0 %v258_v48  ;;  %v1686_v22 = vsel %vm2308_vm6, 1.0, %v2059_v24 }
  0x20   :  { %1896 = vmatprep.subr.mxu0 %v2176_v39  ;;  %v2339_v45 = vsub.f32 %v850_v37, %v2312_v21 }
  0x21   :  { %1860 = vmatmul.mubr.f32.gmra.mxu1 %v2212_v63  ;;  %1897 = vmatpush3.msra.mxu0 %v2176_v39 }
  0x22   :  { %1870 = vmatmul.mubr.f32.gmra.mxu0 %v2162_v34  ;;  %1882 = vmatprep.mubr.f32.mxu1 %v149_v28  ;;  %v842_v28 = vld [vmem:[%s2690_s3 + $0x10] sm:$0xff]  ;;  %v859_v34 = vsel %vm848_vm4, %v843_v44, 0  ;;  %v943_v48 = vand.u32 4294901760, %v2339_v45 }
  0x23   :  { %1872 = vmatprep.mubr.f32.mxu0 %v2165_v35  ;;  %1926 = vmatprep.subr.msk.mxu0 %vm2242_vm3, %v2060_v31  ;;  %v856_v8 = vsel %vm848_vm4, %v842_v28, 0  ;;  %v2353_v35 = vsub.f32 %v1686_v22, %v1686_v22  ;;  %v2371_v50 = vand.u32 4294901760, %v859_v34 }
  0x24   :  { %v2347_v24 = vand.u32 4294901760, %v856_v8 }
  0x25   :  { %1883 = vmatmul.mubr.f32.vlgmr.msra.gmra.mxu1 %v159_v29  ;;  %v853_v29 = vsel %vm848_vm4, %v841_v20, 0  ;;  %v2389_v55 = vand.u32 4294901760, %v2353_v35  ;;  %v2407_v61 = vsub.f32 %v859_v34, %v2371_v50 }
  0x26   :  { %1873 = vmatmul.mubr.f32.gmra.mxu0 %v2205_v53  ;;  %1911 = vmatpush3.msk.msra.mxu1 %vm2148_vm2, %v2060_v31  ;;  %v2341_v46 = vand.u32 4294901760, %v853_v29  ;;  %v2378_v51 = vsub.f32 %v856_v8, %v2347_v24  ;;  %v865_v53 = vsel %vm848_vm4, %v845_v47, 0 }
  0x27   :  { %1885 = vmatprep.mubr.f32.mxu1 %v169_v32  ;;  %1875 = vmatprep.mubr.f32.mxu0 %v2218_v1  ;;  %v844_v32 = vld [vmem:[%s2690_s3 + $0x20] sm:$0xff]  ;;  %v2409_v62 = vand.u32 4294901760, %v865_v53  ;;  %v2419_v1 = vand.u32 4294901760, %v868_v56  ;;  %s2061_s3 = smov [#allocation2]  }
  0x28   :  { %1912 = vmatprep.subr.msk.mxu1 %vm2126_vm1, %v2060_v31  ;;  %v2369_v49 = vsub.f32 %v853_v29, %v2341_v46  ;;  %v963_v0 = vand.u32 4294901760, %v2378_v51  ;;  %s1674_s22 = sshll.u32 %s2061_s3, 4  ;;  %s1675_s22 = int_to_ptr.vmem [resolvable:$true] %s1674_s22 }
  0x29   :  { %1886 = vmatmul.mubr.f32.gmra.mxu1 %v179_v41  ;;  %v2351_v41 = vand.u32 4294901760, %v2321_v40  ;;  %v2435_v7 = vsub.f32 %v865_v53, %v2409_v62  ;;  %v2446_v16 = vsub.f32 %v868_v56, %v2419_v1  ;;  %s2037_s23 = scalar_lea.vmem %s1675_s22, 16  ;;  %s2041_s24 = scalar_lea.vmem %s1675_s22, 32 }
  0x2a   :  { %1876 = vmatmul.mubr.f32.gmra.mxu0 %v2221_v2  ;;  %1888 = vmatprep.mubr.f32.mxu1 %v189_v42  ;;  %v862_v42 = vsel %vm848_vm4, %v844_v32, 0  ;;  %v953_v60 = vand.u32 4294901760, %v2369_v49  ;;  %v871_v2 = vsel %vm848_vm4, %v847_v57, 0  ;;  %v964_v12 = vsub.f32 %v2378_v51, %v963_v0  ;;  %p2038_p0 = scmp.ne.s32.totalorder %s1675_s22, %s2037_s23  ;;  %p2042_p1 = scmp.lt.s32.totalorder %s1675_s22, %s1675_s22 }
  0x2b   :  { %1898 = vmatprep.mubr.f32.mxu0 %v2106_v9  ;;  %1913 = vmatpush3.msk.msra.mxu1 %vm2126_vm1, %v2060_v31  ;;  %v2380_v52 = vand.u32 4294901760, %v862_v42  ;;  %v1058_v54 = vsub.f32 %v2321_v40, %v2351_v41  ;;  %v2437_v11 = vand.u32 4294901760, %v871_v2  ;;  %v993_v37 = vand.u32 4294901760, %v2435_v7  ;;  %p2043_p2 = scmp.lt.s32.totalorder %s2041_s24, %s2037_s23 }
  0x2c   :  { %1944 = vmatprep.subr.mxu1 %v1052_v27  ;;  %v954_v5 = vsub.f32 %v2369_v49, %v953_v60  ;;  %v965_v20 = vand.u32 4294901760, %v964_v12  ;;  %v1003_v18 = vand.u32 4294901760, %v2446_v16 }
  0x2d   :  { %1889 = vmatmul.mubr.f32.gmra.mxu1 %v199_v58  ;;  %v944_v58 = vsub.f32 %v2339_v45, %v943_v48  ;;  %v1059_v3 = vand.u32 4294901760, %v1058_v54  ;;  %v2456_v38 = vsub.f32 %v871_v2, %v2437_v11  ;;  %v994_v28 = vsub.f32 %v2435_v7, %v993_v37  ;;  %p2044_p3 = por %p2043_p2, %p2042_p1 }
  0x2e   :  { %1899 = vmatmul.mubr.f32.vlgmr.msra.gmra.mxu0 %v2108_v10  ;;  %1891 = vmatprep.mubr.f32.mxu1 %v209_v4  ;;  %v1065_v4 = vsub.f32 %v2353_v35, %v2389_v55  ;;  %v1004_v8 = vsub.f32 %v2446_v16, %v1003_v18 }
  0x2f   :  { %1901 = vmatprep.mubr.f32.mxu0 %v2117_v14  ;;  %1927 = vmatpush3.msk.msra.mxu0 %vm2242_vm3, %v2060_v31  ;;  %v1013_v29 = vand.u32 4294901760, %v2456_v38  ;;  %p2045_p4 = pnand %p2044_p3, %p2038_p0 }
  0x30   :  { %1928 = vmatprep.subr.msk.mxu0 %vm2281_vm5, %v2060_v31  ;;  %v1066_v17 = vand.u32 4294901760, %v1065_v4  ;;  %v1005_v44 = vand.u32 4294901760, %v1004_v8 }
  0x31   :  { %1892 = vmatmul.mubr.f32.gmra.mxu1 %v219_v6  ;;  %1929 = vmatpush3.msk.msra.mxu0 %vm2281_vm5, %v2060_v31  ;;  %v973_v6 = vand.u32 4294901760, %v2407_v61 }
  0x32   :  { %1902 = vmatmul.mubr.f32.gmra.mxu0 %v2140_v23  ;;  %1914 = vmatprep.mubr.f32.mxu1 %v2106_v9  ;;  %v2417_v9 = vsub.f32 %v862_v42, %v2380_v52 }
  0x33   :  { %1904 = vmatprep.mubr.f32.mxu0 %v2145_v26  ;;  %1930 = vmatprep.subr.msk.mxu0 %vm2308_vm6, %v2060_v31  ;;  %v974_v33 = vsub.f32 %v2407_v61, %v973_v6 }
  0x34   :  { %1931 = vmatpush3.msk.msra.mxu0 %vm2308_vm6, %v2060_v31  ;;  %v983_v13 = vand.u32 4294901760, %v2417_v9 }
  0x35   :  { %1915 = vmatmul.mubr.f32.vlgmr.msra.gmra.mxu1 %v2108_v10  ;;  %1962 = vmatprep.subr.mxu0 %v2262_v25  ;;  %v945_v10 = vand.u32 4294901760, %v944_v58 }
  0x36   :  { %1905 = vmatmul.mubr.f32.gmra.mxu0 %v2186_v43  ;;  %1945 = vmatpush3.msra.mxu1 %v1052_v27 }
  0x37   :  { %1917 = vmatprep.mubr.f32.mxu1 %v2117_v14  ;;  %1907 = vmatprep.mubr.f32.mxu0 %v2210_v59  ;;  %v955_v14 = vand.u32 4294901760, %v954_v5 }
  0x38   :  { %1946 = vmatprep.subr.mxu1 %v1059_v3 }
  0x39   :  { %1918 = vmatmul.mubr.f32.gmra.mxu1 %v2140_v23  ;;  %v984_v23 = vsub.f32 %v2417_v9, %v983_v13 }
  0x3a   :  { %1908 = vmatmul.mubr.f32.gmra.mxu0 %v2212_v63  ;;  %1920 = vmatprep.mubr.f32.mxu1 %v2145_v26  ;;  %v975_v26 = vand.u32 4294901760, %v974_v33 }
  0x3b   :  { %1947 = vmatpush3.msra.mxu1 %v1059_v3  ;;  %1932 = vmatprep.mubr.f32.mxu0 %v945_v10  ;;  %v985_v27 = vand.u32 4294901760, %v984_v23 }
  0x3c   :  { %1948 = vmatprep.subr.mxu1 %v1066_v17 }
  0x3d   :  { %1921 = vmatmul.mubr.f32.gmra.mxu1 %v2186_v43  ;;  %v995_v43 = vand.u32 4294901760, %v994_v28 }
  0x3e   :  { %1933 = vmatmul.mubr.f32.vlgmr.msra.gmra.mxu0 %v955_v14  ;;  %1923 = vmatprep.mubr.f32.mxu1 %v2210_v59  ;;  %v1014_v59 = vsub.f32 %v2456_v38, %v1013_v29 }
  0x3f   :  { %1935 = vmatprep.mubr.f32.mxu0 %v965_v20  ;;  %1949 = vmatpush3.msra.mxu1 %v1066_v17 }
  0x40   :  { %1963 = vmatpush3.msra.mxu0 %v2262_v25  ;;  %1980 = vmatprep.subr.msk.mxu1 %vm2242_vm3, %v2060_v31 }
  0x41   :  { %1924 = vmatmul.mubr.f32.gmra.mxu1 %v2212_v63  ;;  %1964 = vmatprep.subr.mxu0 %v2321_v40  ;;  %v1015_v63 = vand.u32 4294901760, %v1014_v59 }
  0x42   :  { %1936 = vmatmul.mubr.f32.gmra.mxu0 %v975_v26  ;;  %1950 = vmatprep.mubr.f32.mxu1 %v2312_v21 }
  0x43   :  { %1938 = vmatprep.mubr.f32.mxu0 %v985_v27  ;;  %1965 = vmatpush3.msra.mxu0 %v2321_v40 }
  0x44   :  { %1966 = vmatprep.subr.mxu0 %v2353_v35 }
  0x45   :  { %1951 = vmatmul.mubr.f32.vlgmr.msra.gmra.mxu1 %v2341_v46  ;;  %1967 = vmatpush3.msra.mxu0 %v2353_v35 }
  0x46   :  { %1939 = vmatmul.mubr.f32.gmra.mxu0 %v995_v43  ;;  %1981 = vmatpush3.msk.msra.mxu1 %vm2242_vm3, %v2060_v31 }
  0x47   :  { %1953 = vmatprep.mubr.f32.mxu1 %v2347_v24  ;;  %1941 = vmatprep.mubr.f32.mxu0 %v1005_v44 }
  0x48   :  { %1982 = vmatprep.subr.msk.mxu1 %vm2281_vm5, %v2060_v31  ;;  %1998 = vmatprep.subr.mxu0 %v2270_v30 }
  0x49   :  { %1954 = vmatmul.mubr.f32.gmra.mxu1 %v2371_v50 }
  0x4a   :  { %1942 = vmatmul.mubr.f32.gmra.mxu0 %v1015_v63  ;;  %1956 = vmatprep.mubr.f32.mxu1 %v2380_v52 }
  0x4b   :  { %1983 = vmatpush3.msk.msra.mxu1 %vm2281_vm5, %v2060_v31  ;;  %1968 = vmatprep.mubr.f32.mxu0 %v2339_v45 }
  0x4c   :  { %1984 = vmatprep.subr.msk.mxu1 %vm2308_vm6, %v2060_v31 }
  0x4d   :  { %1957 = vmatmul.mubr.f32.gmra.mxu1 %v2409_v62 }
  0x4e   :  { %1969 = vmatmul.mubr.f32.vlgmr.msra.gmra.mxu0 %v2369_v49  ;;  %1959 = vmatprep.mubr.f32.mxu1 %v2419_v1 }
  0x4f   :  { %1971 = vmatprep.mubr.f32.mxu0 %v2378_v51  ;;  %1985 = vmatpush3.msk.msra.mxu1 %vm2308_vm6, %v2060_v31 }
  0x50   :  { %1999 = vmatpush3.msra.mxu0 %v2270_v30  ;;  %2016 = vmatprep.subr.msk.mxu1 %vm2242_vm3, %v2060_v31 }
  0x51   :  { %1960 = vmatmul.mubr.f32.gmra.mxu1 %v2437_v11  ;;  %2000 = vmatprep.subr.mxu0 %v2351_v41 }
  0x52   :  { %1972 = vmatmul.mubr.f32.gmra.mxu0 %v2407_v61  ;;  %1986 = vmatprep.mubr.f32.mxu1 %v943_v48 }
  0x53   :  { %1974 = vmatprep.mubr.f32.mxu0 %v2417_v9  ;;  %2001 = vmatpush3.msra.mxu0 %v2351_v41 }
  0x54   :  { %2002 = vmatprep.subr.mxu0 %v2389_v55 }
  0x55   :  { %1987 = vmatmul.mubr.f32.vlgmr.msra.gmra.mxu1 %v953_v60  ;;  %2003 = vmatpush3.msra.mxu0 %v2389_v55 }
  0x56   :  { %1975 = vmatmul.mubr.f32.gmra.mxu0 %v2435_v7  ;;  %2017 = vmatpush3.msk.msra.mxu1 %vm2242_vm3, %v2060_v31 }
  0x57   :  { %1989 = vmatprep.mubr.f32.mxu1 %v963_v0  ;;  %1977 = vmatprep.mubr.f32.mxu0 %v2446_v16 }
  0x58   :  { %2018 = vmatprep.subr.msk.mxu1 %vm2281_vm5, %v2060_v31 }
  0x59   :  { %1990 = vmatmul.mubr.f32.gmra.mxu1 %v973_v6 }
  0x5a   :  { %1978 = vmatmul.mubr.f32.gmra.mxu0 %v2456_v38  ;;  %1992 = vmatprep.mubr.f32.mxu1 %v983_v13 }
  0x5b   :  { %2019 = vmatpush3.msk.msra.mxu1 %vm2281_vm5, %v2060_v31  ;;  %2004 = vmatprep.mubr.f32.mxu0 %v2312_v21 }
  0x5c   :  { %2020 = vmatprep.subr.msk.mxu1 %vm2308_vm6, %v2060_v31 }
  0x5d   :  { %1993 = vmatmul.mubr.f32.gmra.mxu1 %v993_v37 }
  0x5e   :  { %2005 = vmatmul.mubr.f32.vlgmr.msra.gmra.mxu0 %v2341_v46  ;;  %1995 = vmatprep.mubr.f32.mxu1 %v1003_v18 }
  0x5f   :  { %2007 = vmatprep.mubr.f32.mxu0 %v2347_v24  ;;  %2021 = vmatpush3.msk.msra.mxu1 %vm2308_vm6, %v2060_v31 }
  0x61   :  { %1996 = vmatmul.mubr.f32.gmra.mxu1 %v1013_v29 }
  0x62   :  { %2008 = vmatmul.mubr.f32.gmra.mxu0 %v2371_v50  ;;  %2022 = vmatprep.mubr.f32.mxu1 %v2312_v21 }
  0x63   :  { %2010 = vmatprep.mubr.f32.mxu0 %v2380_v52 }
  0x65   :  { %2023 = vmatmul.mubr.f32.vlgmr.msra.gmra.mxu1 %v2341_v46 }
  0x66   :  { %2011 = vmatmul.mubr.f32.gmra.mxu0 %v2409_v62  ;;  %2025 = vmatprep.mubr.f32.mxu1 %v2347_v24 }
  0x67   :  { %2013 = vmatprep.mubr.f32.mxu0 %v2419_v1 }
  0x69   :  { %2026 = vmatmul.mubr.f32.gmra.mxu1 %v2371_v50 }
  0x6a   :  { %2014 = vmatmul.mubr.f32.gmra.mxu0 %v2437_v11  ;;  %2028 = vmatprep.mubr.f32.mxu1 %v2380_v52 }
  0x6d   :  { %2029 = vmatmul.mubr.f32.gmra.mxu1 %v2409_v62 }
  0x6e   :  { %2031 = vmatprep.mubr.f32.mxu1 %v2419_v1 }
  0x71   :  { %2032 = vmatmul.mubr.f32.gmra.mxu1 %v2437_v11 }
  0xce   :  { %v1836_v31 = vpop.f32.mrf.mxu0 }
  0xd0   :  { %v153_v15 = vpop.f32.mrf.mxu0 }
  0xd2   :  { %v1839_v25 = vpop.f32.mrf.mxu0 }
  0xd4   :  { %v173_v30 = vpop.f32.mrf.mxu0 }
  0xd5   :  { %v1852_v36 = vpop.f32.mrf.mxu1 }
  0xd6   :  { %v311_v39 = vadd.f32 %v1852_v36, %v1836_v31  ;;  %v1842_v21 = vpop.f32.mrf.mxu0 }
  0xd7   :  { %v304_v40 = vpop.f32.mrf.mxu1 }
  0xd8   :  { %v2570_v22 = vadd.f32 %v304_v40, %v153_v15  ;;  %v193_v32 = vpop.f32.mrf.mxu0 }
  0xd9   :  { %v1855_v45 = vpop.f32.mrf.mxu1 }
  0xda   :  { %v323_v46 = vadd.f32 %v1855_v45, %v1839_v25  ;;  %v1845_v24 = vpop.f32.mrf.mxu0 }
  0xdb   :  { %v316_v34 = vpop.f32.mrf.mxu1 }
  0xdc   :  { %v2572_v41 = vadd.f32 %v316_v34, %v173_v30  ;;  %v213_v35 = vpop.f32.mrf.mxu0 }
  0xdd   :  { %v1858_v42 = vpop.f32.mrf.mxu1 }
  0xde   :  { %v335_v47 = vadd.f32 %v1858_v42, %v1842_v21  ;;  %v1868_v19 = vpop.f32.mrf.mxu0 }
  0xdf   :  { %v430_v48 = vadd.f32 %v1868_v19, %v311_v39  ;;  %v328_v49 = vpop.f32.mrf.mxu1 }
  0xe0   :  { %v2574_v50 = vadd.f32 %v328_v49, %v193_v32  ;;  %v2576_v51 = vpop.f32.mrf.mxu0 }
  0xe1   :  { %v1861_v52 = vpop.f32.mrf.mxu1 }
  0xe2   :  { %v347_v53 = vadd.f32 %v1861_v52, %v1845_v24  ;;  %v1871_v54 = vpop.f32.mrf.mxu0 }
  0xe3   :  { %v444_v55 = vadd.f32 %v1871_v54, %v323_v46  ;;  %v340_v56 = vpop.f32.mrf.mxu1 }
  0xe4   :  { %v2578_v57 = vadd.f32 %v340_v56, %v213_v35  ;;  %v2580_v58 = vpop.f32.mrf.mxu0 }
  0xe5   :  { %v1884_v60 = vpop.f32.mrf.mxu1 }
  0xe6   :  { %v2582_v61 = vadd.f32 %v1884_v60, %v430_v48  ;;  %v1874_v62 = vpop.f32.mrf.mxu0 }
  0xe7   :  { %v458_v0 = vadd.f32 %v1874_v62, %v335_v47  ;;  %v2584_v9 = vpop.f32.mrf.mxu1 }
  0xe8   :  { %v2586_v1 = vpop.f32.mrf.mxu0 }
  0xe9   :  { %v1887_v2 = vpop.f32.mrf.mxu1 }
  0xea   :  { %v2588_v3 = vadd.f32 %v1887_v2, %v444_v55  ;;  %v1877_v4 = vpop.f32.mrf.mxu0 }
  0xeb   :  { %v472_v5 = vadd.f32 %v1877_v4, %v347_v53  ;;  %v2590_v6 = vpop.f32.mrf.mxu1 }
  0xec   :  { %v2592_v7 = vpop.f32.mrf.mxu0 }
  0xed   :  { %v1890_v11 = vpop.f32.mrf.mxu1 }
  0xee   :  { %v2594_v10 = vadd.f32 %v1890_v11, %v458_v0  ;;  %v2596_v12 = vpop.f32.mrf.mxu0 }
  0xef   :  { %v2598_v13 = vpop.f32.mrf.mxu1 }
  0xf0   :  { %2702 = vst [vmem:[#allocation5_spill] sm:$0xff] %v2594_v10  ;;  %v2600_v16 = vpop.f32.mrf.mxu0  ;;  %v437_v10 = vadd.f32 %v2580_v58, %v2572_v41 }
  0xf1   :  { %v1893_v17 = vpop.f32.mrf.mxu1 }
  0xf2   :  { %v2602_v14 = vadd.f32 %v1893_v17, %v472_v5  ;;  %v2604_v33 = vpop.f32.mrf.mxu0 }
  0xf3   :  { %v2606_v37 = vpop.f32.mrf.mxu1 }
  0xf4   :  { %2703 = vst [vmem:[#allocation6_spill] sm:$0xff] %v2602_v14  ;;  %v2608_v38 = vpop.f32.mrf.mxu0  ;;  %v423_v14 = vadd.f32 %v2576_v51, %v2570_v22  ;;  %v563_v22 = vadd.f32 %v2590_v6, %v437_v10  ;;  %v465_v51 = vadd.f32 %v2592_v7, %v2578_v57 }
  0xf5   :  { %v2610_v20 = vpop.f32.mrf.mxu1 }
  0xf6   :  { %v2612_v23 = vpop.f32.mrf.mxu0 }
  0xf7   :  { %2704 = vst [vmem:[#allocation7_spill] sm:$0xff] %v2612_v23  ;;  %v2614_v18 = vpop.f32.mrf.mxu1 }
  0xf8   :  { %v2616_v26 = vpop.f32.mrf.mxu0 }
  0xf9   :  { %v2618_v28 = vpop.f32.mrf.mxu1 }
  0xfa   :  { %2705 = vst [vmem:[#allocation8_spill] sm:$0xff] %v2618_v28  ;;  %v2620_v29 = vpop.f32.mrf.mxu0  ;;  %v547_v28 = vadd.f32 %v2584_v9, %v423_v14 }
  0xfb   :  { %2706 = vst [vmem:[#allocation9_spill] sm:$0xff] %v2620_v29  ;;  %v2622_v27 = vpop.f32.mrf.mxu1 }
  0xfc   :  { %v2624_v8 = vpop.f32.mrf.mxu0  ;;  %v680_v41 = vadd.f32 %v2600_v16, %v547_v28  ;;  %v698_v16 = vadd.f32 %v2604_v33, %v2588_v3  ;;  %v692_v28 = vadd.f32 %v2608_v38, %v563_v22 }
  0xfd   :  { %2707 = vst [vmem:[#allocation10_spill] sm:$0xff] %v2624_v8  ;;  %v2626_v43 = vpop.f32.mrf.mxu1 }
  0xfe   :  { %2708 = vst [vmem:[#allocation11_spill] sm:$0xff] %v2626_v43  ;;  %v1934_v59 = vpop.f32.mrf.mxu0  ;;  %v795_v57 = vadd.f32 %v2614_v18, %v680_v41 }
  0xff   :  { %v2628_v44 = vpop.f32.mrf.mxu1 }
 0x100   :  { %2709 = vst [vmem:[#allocation12_spill] sm:$0xff] %v2628_v44  ;;  %v947_v63 = vpop.f32.mrf.mxu0 }
 0x101   :  { %v2630_v31 = vpop.f32.mrf.mxu1 }
 0x102   :  { %2710 = vst [vmem:[#allocation13_spill] sm:$0xff] %v2630_v31  ;;  %v1937_v15 = vpop.f32.mrf.mxu0 }
 0x103   :  { %v2632_v25 = vpop.f32.mrf.mxu1 }
 0x104   :  { %2711 = vst [vmem:[#allocation14_spill] sm:$0xff] %v2632_v25  ;;  %v967_v30 = vpop.f32.mrf.mxu0 }
 0x105   :  { %v1952_v36 = vpop.f32.mrf.mxu1  ;;  %v2719_v41 = vld [vmem:[#allocation11_spill] sm:$0xff] }
 0x106   :  { %v1940_v39 = vpop.f32.mrf.mxu0  ;;  %v1110_v5 = vadd.f32 %v1952_v36, %v1934_v59  ;;  %v451_v59 = vadd.f32 %v2586_v1, %v2574_v50 }
 0x107   :  { %v1103_v21 = vpop.f32.mrf.mxu1 }
 0x108   :  { %v987_v40 = vpop.f32.mrf.mxu0  ;;  %v1104_v31 = vadd.f32 %v1103_v21, %v947_v63 }
 0x109   :  { %v1955_v32 = vpop.f32.mrf.mxu1 }
 0x10a   :  { %v2634_v45 = vpop.f32.mrf.mxu0  ;;  %v1122_v63 = vadd.f32 %v1955_v32, %v1937_v15 }
 0x10b   :  { %v1115_v46 = vpop.f32.mrf.mxu1 }
 0x10c   :  { %v2636_v24 = vpop.f32.mrf.mxu0  ;;  %v1116_v21 = vadd.f32 %v1115_v46, %v967_v30 }
 0x10d   :  { %v1958_v34 = vpop.f32.mrf.mxu1 }
 0x10e   :  { %v1970_v35 = vpop.f32.mrf.mxu0 }
 0x10f   :  { %v1127_v42 = vpop.f32.mrf.mxu1  ;;  %v1231_v25 = vadd.f32 %v1970_v35, %v1110_v5 }
 0x110   :  { %v1223_v47 = vpop.f32.mrf.mxu0  ;;  %v1128_v6 = vadd.f32 %v1127_v42, %v987_v40  ;;  %v807_v40 = vadd.f32 %v2622_v27, %v692_v28 }
 0x111   :  { %v2638_v19 = vpop.f32.mrf.mxu1  ;;  %v1224_v8 = vadd.f32 %v1223_v47, %v1104_v31  ;;  %v686_v31 = vadd.f32 %v2596_v12, %v2582_v61 }
 0x112   :  { %v1973_v48 = vpop.f32.mrf.mxu0  ;;  %v1146_v18 = vadd.f32 %v2638_v19, %v2634_v45 }
 0x113   :  { %v1139_v49 = vpop.f32.mrf.mxu1  ;;  %v1245_v9 = vadd.f32 %v1973_v48, %v1122_v63 }
 0x114   :  { %v1237_v52 = vpop.f32.mrf.mxu0 }
 0x115   :  { %v1988_v53 = vpop.f32.mrf.mxu1  ;;  %v1238_v14 = vadd.f32 %v1237_v52, %v1116_v21 }
 0x116   :  { %v1976_v54 = vpop.f32.mrf.mxu0  ;;  %v1357_v44 = vadd.f32 %v1988_v53, %v1231_v25  ;;  %v1134_v25 = vadd.f32 %v1958_v34, %v1940_v39  ;;  %v1140_v34 = vadd.f32 %v1139_v49, %v2636_v24 }
 0x117   :  { %v1348_v55 = vpop.f32.mrf.mxu1 }
 0x118   :  { %v1251_v56 = vpop.f32.mrf.mxu0  ;;  %v1349_v35 = vadd.f32 %v1348_v55, %v1224_v8  ;;  %v579_v8 = vadd.f32 %v2598_v13, %v451_v59 }
 0x119   :  { %v1991_v60 = vpop.f32.mrf.mxu1  ;;  %v1252_v32 = vadd.f32 %v1251_v56, %v1128_v6 }
 0x11a   :  { %v2640_v62 = vpop.f32.mrf.mxu0  ;;  %v1373_v7 = vadd.f32 %v1991_v60, %v1245_v9 }
 0x11b   :  { %v1364_v0 = vpop.f32.mrf.mxu1  ;;  %v1273_v55 = vadd.f32 %v2640_v62, %v1146_v18 }
 0x11c   :  { %v2642_v2 = vpop.f32.mrf.mxu0  ;;  %v1365_v30 = vadd.f32 %v1364_v0, %v1238_v14  ;;  %v2714_v0 = vld [vmem:[#allocation8_spill] sm:$0xff] }
 0x11d   :  { %2712 = vst [vmem:[#allocation15_spill] sm:$0xff] %v2642_v2  ;;  %v1994_v4 = vpop.f32.mrf.mxu1  ;;  %v813_v45 = vadd.f32 %v2714_v0, %v698_v16 }
 0x11e   :  { %v2006_v11 = vpop.f32.mrf.mxu0 }
 0x11f   :  { %v1380_v17 = vpop.f32.mrf.mxu1  ;;  %v1491_v5 = vadd.f32 %v2006_v11, %v1357_v44  ;;  %v801_v44 = vadd.f32 %v2610_v20, %v686_v31 }
 0x120   :  { %v1484_v29 = vpop.f32.mrf.mxu0  ;;  %v1381_v3 = vadd.f32 %v1380_v17, %v1252_v32  ;;  %v2717_v17 = vld [vmem:[#allocation12_spill] sm:$0xff] }
 0x121   :  { %v2646_v43 = vpop.f32.mrf.mxu1  ;;  %v1485_v50 = vadd.f32 %v1484_v29, %v1349_v35  ;;  %v1259_v29 = vadd.f32 %v1976_v54, %v1134_v25  ;;  %v595_v54 = vadd.f32 %v2606_v37, %v465_v51  ;;  %v2718_v51 = vld [vmem:[#allocation10_spill] sm:$0xff] }
 0x122   :  { %v2009_v23 = vpop.f32.mrf.mxu0  ;;  %v1405_v63 = vadd.f32 %v2646_v43, %v1273_v55  ;;  %v2722_v43 = vld [vmem:[#allocation14_spill] sm:$0xff] }
 0x123   :  { %v1396_v36 = vpop.f32.mrf.mxu1  ;;  %v1503_v13 = vadd.f32 %v2009_v23, %v1373_v7  ;;  %v1389_v42 = vadd.f32 %v1994_v4, %v1259_v29  ;;  %v704_v23 = vadd.f32 %v2616_v26, %v579_v8  ;;  %v2716_v4 = vld [vmem:[#allocation7_spill] sm:$0xff]  ;;  %v716_v31 = vadd.f32 %v2718_v51, %v595_v54  ;;  %v2720_v8 = vld [vmem:[#allocation6_spill] sm:$0xff] }
 0x124   :  { %v1496_v2 = vpop.f32.mrf.mxu0  ;;  %v2713_v56 = vld [vmem:[#allocation15_spill] sm:$0xff] }
 0x125   :  { %v2024_v58 = vpop.f32.mrf.mxu1  ;;  %v1497_v47 = vadd.f32 %v1496_v2, %v1365_v30  ;;  %v1266_v27 = vadd.f32 %v2713_v56, %v1140_v34  ;;  %v2715_v2 = vld [vmem:[#allocation5_spill] sm:$0xff]  ;;  %v819_v59 = vadd.f32 %v2717_v17, %v704_v23 }
 0x126   :  { %v1607_v1 = vadd.f32 %v2024_v58, %v1491_v5  ;;  %v2012_v15 = vpop.f32.mrf.mxu0  ;;  %v710_v11 = vadd.f32 %v2716_v4, %v2715_v2 }
 0x127   :  { %v1600_v10 = vpop.f32.mrf.mxu1  ;;  %v1515_v19 = vadd.f32 %v2012_v15, %v1389_v42  ;;  %v1397_v37 = vadd.f32 %v1396_v36, %v1266_v27  ;;  %v831_v36 = vadd.f32 %v2722_v43, %v716_v31 }
 0x128   :  { %v1601_v61 = vadd.f32 %v1600_v10, %v1485_v50  ;;  %v1508_v12 = vpop.f32.mrf.mxu0  ;;  %v1647_v20 = vmul.f32 %v1607_v1, %v801_v44  ;;  %v825_v58 = vadd.f32 %v2719_v41, %v710_v11  ;;  %v2721_v44 = vld [vmem:[#allocation9_spill] sm:$0xff] }
 0x129   :  { %v2027_v46 = vpop.f32.mrf.mxu1  ;;  %v1509_v24 = vadd.f32 %v1508_v12, %v1381_v3  ;;  %v722_v25 = vadd.f32 %v2721_v44, %v2720_v8 }
 0x12a   :  { %v1646_v39 = vmul.f32 %v1601_v61, %v795_v57  ;;  %v2015_v48 = vpop.f32.mrf.mxu0  ;;  %v1619_v38 = vadd.f32 %v2027_v46, %v1503_v13  ;;  %v2723_v61 = vld [vmem:[#allocation13_spill] sm:$0xff] }
 0x12b   :  { %v1612_v52 = vpop.f32.mrf.mxu1  ;;  %v1527_v14 = vadd.f32 %v2015_v48, %v1405_v63  ;;  %v837_v12 = vadd.f32 %v2723_v61, %v722_v25 }
 0x12c   :  { %v1654_v33 = vadd.f32 %v1647_v20, %v1646_v39  ;;  %v1613_v53 = vadd.f32 %v1612_v52, %v1497_v47  ;;  %v1520_v21 = vpop.f32.mrf.mxu0  ;;  %v1649_v35 = vmul.f32 %v1619_v38, %v813_v45 }
 0x12d   :  { %v2030_v60 = vpop.f32.mrf.mxu1  ;;  %v1521_v50 = vadd.f32 %v1520_v21, %v1397_v37 }
 0x12e   :  { %v1648_v49 = vmul.f32 %v1613_v53, %v807_v40  ;;  %v1631_v5 = vadd.f32 %v2030_v60, %v1515_v19 }
 0x12f   :  { %v1624_v26 = vpop.f32.mrf.mxu1 }
 0x130   :  { %v1655_v62 = vadd.f32 %v1654_v33, %v1648_v49  ;;  %v1625_v22 = vadd.f32 %v1624_v26, %v1509_v24  ;;  %v1651_v10 = vmul.f32 %v1631_v5, %v825_v58 }
 0x131   :  { %v2033_v9 = vpop.f32.mrf.mxu1 }
 0x132   :  { %v1650_v1 = vmul.f32 %v1625_v22, %v819_v59  ;;  %v1656_v15 = vadd.f32 %v1655_v62, %v1649_v35  ;;  %v1643_v7 = vadd.f32 %v2033_v9, %v1527_v14 }
 0x133   :  { %v1636_v6 = vpop.f32.mrf.mxu1 }
 0x134   :  { %v1657_v57 = vadd.f32 %v1656_v15, %v1650_v1  ;;  %v1637_v30 = vadd.f32 %v1636_v6, %v1521_v50  ;;  %v1653_v29 = vmul.f32 %v1643_v7, %v837_v12 }
 0x136   :  { %v1652_v16 = vmul.f32 %v1637_v30, %v831_v36  ;;  %v1658_v28 = vadd.f32 %v1657_v57, %v1651_v10 }
 0x138   :  { %v1659_v32 = vadd.f32 %v1658_v28, %v1652_v16 }
 0x13a   :  { %v1660_v46 = vadd.f32 %v1659_v32, %v1653_v29 }
 0x13c   :  { %v1661_v13 = vrot.slane %v1660_v46, 4 }
 0x13e   :  { %v1662_v47 = vadd.f32 %v1661_v13, %v1660_v46 }
 0x140   :  { %v1663_v20 = vrot.slane %v1662_v47, 2 }
 0x142   :  { %v1664_v39 = vadd.f32 %v1663_v20, %v1662_v47 }
 0x144   :  { %v1665_v40 = vrot.slane %v1664_v39, 1 }
 0x146   :  { %v1666_v18 = vadd.f32 %v1665_v40, %v1664_v39 }
 0x148   :  { %1667 = vst [vmem:[#allocation2] sm:$0x1] %v1666_v18 }
 0x149   :  { %2048 = shalt.err (!%p2045_p4)
}
 0x14a   :  { %1677 = dma.vmem_to_hbm [thread:$0]  %s1675_s22, 16, %s2691_s4, [#allocation3]  }
 0x14b   :  { %2057 = dma.done.wait [#allocation3], 16  }
 0x14c   :  { %2058 = vsyncadd [#allocation3], 4294967280 }
 0x14d   :  { %1681 = vsyncpa [#allocation3], 1 }

</bundles_post_ra>
